<compile_context>
chip_gen: v7x
topology: tpu7x:2x2x1
jax: 0.10.0
libtpu: 0.0.40
codegen_flags: <defaults>
</compile_context>

<pallas_src>
import jax
import jax.numpy as jnp
from jax.experimental import pallas as pl
from jax.experimental.pallas import tpu as pltpu


# TODO(synk): reference forward() is `pass` (returns None); the kernel is an
# identity pass-through since the module defines no parameters or compute.
def _copy_kernel(x_ref, o_ref):
    # Whole-block copy (VPU move); the pipeline overlaps the DMAs around it.
    o_ref[...] = x_ref[...]


# Candidate lane widths, largest first — keep the last dim a big multiple of
# 128 so every store is an unmasked, full-lane vst.
_LANE_WIDTHS = (4096, 2048, 1024, 512, 256, 128)


def _choose_block_rows(rows: int, lane: int, itemsize: int) -> int:
    """Pick a block row count: ~2 MiB per block, multiple of 8 (or full rows)."""
    target_bytes = 2 << 20  # 2 MiB block => 4 double-buffered buffers ~= 8 MiB
    max_rows = max(8, (target_bytes // (lane * itemsize)) // 8 * 8)
    if rows <= max_rows:
        return rows          # block == full second-minor dim -> always legal
    return max_rows          # multiple of 8 -> legal; grid masks any remainder


def coordinate_encoder_forward(x: jax.Array) -> jax.Array:
    """Pallas 'forward' for CoordinateEncoder (identity pass-through).

    The PyTorch module performs no computation; this returns x unchanged via a
    lane-dense, tiled, output-aliased Pallas copy.
    """
    orig_shape = x.shape
    n = x.size

    lane = None
    for cand in _LANE_WIDTHS:
        if n % cand == 0:
            lane = cand
            break
    if lane is None:
        # TODO(synk): element count not a multiple of 128 — a Pallas copy would
        # only add masked-store overhead; plain identity is the correct op.
        return x

    rows = n // lane
    x2d = x.reshape(rows, lane)

    block_rows = _choose_block_rows(rows, lane, x.dtype.itemsize)
    grid = (pl.cdiv(rows, block_rows),)

    out2d = pl.pallas_call(
        _copy_kernel,
        out_shape=jax.ShapeDtypeStruct(x2d.shape, x2d.dtype),
        grid=grid,
        in_specs=[pl.BlockSpec((block_rows, lane), lambda i: (i, 0))],
        out_specs=pl.BlockSpec((block_rows, lane), lambda i: (i, 0)),
        # Output aliases the (flattened) input buffer: no extra HBM allocation.
        input_output_aliases={0: 0},
        compiler_params=pltpu.CompilerParams(
            dimension_semantics=("parallel",),
        ),
    )(x2d)

    return out2d.reshape(orig_shape)


if __name__ == "__main__":
    key = jax.random.PRNGKey(0)
    # Small NCHW input consistent with a VAE-style encoder front-end.
    x = jax.random.normal(key, (2, 4, 16, 16), dtype=jnp.float32)

    fwd = jax.jit(coordinate_encoder_forward)
    y = jax.block_until_ready(fwd(x))

    # Sanity: identity pass-through must match the input exactly.
    assert y.shape == x.shape and y.dtype == x.dtype
    assert bool(jnp.all(y == x))

    print("KERNEL_OK")
</pallas_src>

<mosaic_0001>
module attributes {stable_mosaic.version = 11 : i64} {
  func.func @_copy_kernel(%arg0: i32, %arg1: memref<1x2048xf32, #tpu.memory_space<vmem>>, %arg2: memref<1x2048xf32, #tpu.memory_space<vmem>>) attributes {dimension_semantics = [#tpu.dimension_semantics<parallel>], iteration_bounds = array<i64: 1>, scalar_prefetch = 0 : i64, scratch_operands = 0 : i64, tpu.core_type = #tpu.core_type<tc>, window_params = [{transform_indices = @transform_0, window_bounds = array<i64: 1, 2048>}, {transform_indices = @transform_1, window_bounds = array<i64: 1, 2048>}]} {
    %c0 = arith.constant 0 : index
    %c0_0 = arith.constant 0 : index
    %0 = vector.load %arg1[%c0, %c0_0] : memref<1x2048xf32, #tpu.memory_space<vmem>>, vector<1x2048xf32>
    %c0_1 = arith.constant 0 : index
    %c0_2 = arith.constant 0 : index
    %1 = vector.load %arg2[%c0_1, %c0_2] : memref<1x2048xf32, #tpu.memory_space<vmem>>, vector<1x2048xf32>
    tpu.vector_store %arg2[%c0_1, %c0_2], %0 {strides = array<i32>} : memref<1x2048xf32, #tpu.memory_space<vmem>>, vector<1x2048xf32>,
    return
  }
  func.func @transform_0(%arg0: i32) -> (i32, i32) {
    %c0_i32 = arith.constant 0 : i32
    %c0_i32_0 = arith.constant 0 : i32
    return %arg0, %c0_i32 : i32, i32
  }
  func.func @transform_1(%arg0: i32) -> (i32, i32) {
    %c0_i32 = arith.constant 0 : i32
    %c0_i32_0 = arith.constant 0 : i32
    return %arg0, %c0_i32 : i32, i32
  }
}

</mosaic_0001>

<bundles_post_ra>
// kernel: coordinate_encoder_forward.1
= control target key start
LH: loop header
LB: loop body
LE: loop exit
PB: predicated region body
PF: predicated region fallthrough
CT: control target
= control target key end

     0   :  { %s38_s0 = inlined_call_operand.vmem [shape: f32[1,2048], index: 0, kind: input, shape index: {}, may-alias: {0,1}]   ;;  %s39_s1 = inlined_call_operand.vmem [shape: f32[1,2048], index: 1, kind: output, shape index: {}, may-alias: {0,1}]  }
   0x1   :  { %v8_v0 = vld [vmem:[%s38_s0] sm:$0xff]  ;;  %v9_v1 = vld [vmem:[%s38_s0 + $0x8] sm:$0xff] }
   0x2   :  { %10 = vst [vmem:[%s39_s1] sm:$0xff] %v8_v0  ;;  %11 = vst [vmem:[%s39_s1 + $0x8] sm:$0xff] %v9_v1 }

</bundles_post_ra>
